<compile_context>
chip_gen: v7x
topology: tpu7x:2x2x1
jax: 0.10.0
libtpu: 0.0.40
codegen_flags: <defaults>
</compile_context>

<pallas_src>
import jax
import jax.numpy as jnp
from jax.experimental import pallas as pl
from jax.experimental.pallas import tpu as pltpu

LN_EPS = 1e-5  # nn.LayerNorm default


def _round_up(v, m):
    return (v + m - 1) // m * m


def _erf_approx(x):
    # Abramowitz & Stegun 7.1.26, |error| <= 1.5e-7 — effectively exact in f32.
    a1, a2, a3, a4, a5 = (0.254829592, -0.284496736, 1.421413741,
                          -1.453152027, 1.061405429)
    p = 0.3275911
    ax = jnp.abs(x)
    t = 1.0 / (1.0 + p * ax)
    poly = ((((a5 * t + a4) * t + a3) * t + a2) * t + a1) * t
    y = 1.0 - poly * jnp.exp(-ax * ax)
    return jnp.where(x < 0, -y, y)


def _gelu_exact(x):
    # PyTorch nn.GELU() default (erf-based).
    return 0.5 * x * (1.0 + _erf_approx(x * 0.7071067811865476))


def _ffn_block_kernel(x_ref, g_ref, b_ref, w1_ref, b1_ref, w2_ref, b2_ref,
                      o_ref, y_scr, acc_scr):
    # x_ref:(tm,D) g/b:(1,D) w1:(D,tk) b1:(1,tk) w2:(tk,D) b2:(1,D) o:(tm,D)
    k = pl.program_id(1)

    @pl.when(k == 0)
    def _():
        x = x_ref[...].astype(jnp.float32)
        inv_d = jnp.float32(1.0 / x.shape[-1])
        s1 = jnp.sum(x, axis=-1, keepdims=True)
        s2 = jnp.sum(x * x, axis=-1, keepdims=True)
        mean = s1 * inv_d
        var = s2 * inv_d - mean * mean
        inv_std = jax.lax.rsqrt(var + LN_EPS)
        y = (x - mean) * inv_std * g_ref[...].astype(jnp.float32) \
            + b_ref[...].astype(jnp.float32)
        y_scr[...] = y.astype(y_scr.dtype)
        acc_scr[...] = jnp.zeros_like(acc_scr)

    # Linear1 (MXU, f32 accumulation) + bias + exact GELU on the hidden slab.
    h = jnp.dot(y_scr[...], w1_ref[...], preferred_element_type=jnp.float32)
    h = _gelu_exact(h + b1_ref[...].astype(jnp.float32))

    # Linear2 partial product accumulated in f32.
    acc_scr[...] += jnp.dot(h.astype(w2_ref.dtype), w2_ref[...],
                            preferred_element_type=jnp.float32)

    @pl.when(k == pl.num_programs(1) - 1)
    def _():
        out = acc_scr[...] + b2_ref[...].astype(jnp.float32) \
              + x_ref[...].astype(jnp.float32)           # residual
        o_ref[...] = out.astype(o_ref.dtype)


def ffn_block(x, gamma, beta, w1, b1, w2, b2, *, tm=512, tk=512):
    """Residual(PreNorm(FeedForward)): x:(B,N,D) -> (B,N,D)."""
    B, N, D = x.shape
    D1, H = w1.shape
    Hw, D2 = w2.shape
    assert D1 == D and D2 == D and Hw == H
    M = B * N

    # ---- tile selection / padding -------------------------------------------
    Hp = _round_up(H, 128)            # lane-dense hidden slabs
    tk = min(tk, Hp)
    if Hp % tk != 0:
        tk = 128                      # 128 always divides Hp
    tm = min(tm, _round_up(M, 8))     # sublane multiple of 8
    Mp = _round_up(M, tm)

    mm_dtype = jnp.bfloat16 if x.dtype == jnp.bfloat16 else jnp.float32

    x2 = x.reshape(M, D)
    if Mp != M:
        x2 = jnp.pad(x2, ((0, Mp - M), (0, 0)))
    if Hp != H:
        w1 = jnp.pad(w1, ((0, 0), (0, Hp - H)))
        b1 = jnp.pad(b1, ((0, Hp - H),))
        w2 = jnp.pad(w2, ((0, Hp - H), (0, 0)))
    w1 = w1.astype(mm_dtype)
    w2 = w2.astype(mm_dtype)
    g2 = gamma.reshape(1, D)
    be2 = beta.reshape(1, D)
    b1_2 = b1.reshape(1, Hp)
    b2_2 = b2.reshape(1, D)

    gm = Mp // tm
    gk = Hp // tk

    itemsize = jnp.dtype(mm_dtype).itemsize
    cost = pl.CostEstimate(
        flops=int(4 * Mp * D * Hp),               # two matmuls
        transcendentals=int(Mp * Hp),             # one exp per GELU element
        bytes_accessed=int(x2.size * x2.dtype.itemsize
                           + gm * (w1.size + w2.size) * itemsize
                           + Mp * D * x.dtype.itemsize),
    )

    # Grid = (row tiles, hidden tiles).  x / output / accumulator are resident
    # across the inner hidden axis; W1/W2 slabs stream through VMEM.
    out2 = pl.pallas_call(
        _ffn_block_kernel,
        out_shape=jax.ShapeDtypeStruct((Mp, D), x.dtype),
        grid_spec=pltpu.PrefetchScalarGridSpec(
            num_scalar_prefetch=0,
            grid=(gm, gk),
            in_specs=[
                pl.BlockSpec((tm, D), lambda i, k: (i, 0)),    # x rows
                pl.BlockSpec((1, D), lambda i, k: (0, 0)),     # gamma
                pl.BlockSpec((1, D), lambda i, k: (0, 0)),     # beta
                pl.BlockSpec((D, tk), lambda i, k: (0, k)),    # W1 slab
                pl.BlockSpec((1, tk), lambda i, k: (0, k)),    # b1 slab
                pl.BlockSpec((tk, D), lambda i, k: (k, 0)),    # W2 slab
                pl.BlockSpec((1, D), lambda i, k: (0, 0)),     # b2
            ],
            out_specs=pl.BlockSpec((tm, D), lambda i, k: (i, 0)),
            scratch_shapes=[
                pltpu.VMEM((tm, D), mm_dtype),      # LayerNorm output cache
                pltpu.VMEM((tm, D), jnp.float32),   # f32 accumulator
            ],
        ),
        compiler_params=pltpu.CompilerParams(
            dimension_semantics=("parallel", "arbitrary"),
            vmem_limit_bytes=48 * 1024 * 1024,
        ),
        cost_estimate=cost,
    )(x2, g2, be2, w1, b1_2, w2, b2_2)

    return out2[:M].reshape(B, N, D)


def _reference(x, gamma, beta, w1, b1, w2, b2):
    xf = x.astype(jnp.float32)
    mean = jnp.mean(xf, axis=-1, keepdims=True)
    var = jnp.mean((xf - mean) ** 2, axis=-1, keepdims=True)
    xn = (xf - mean) / jnp.sqrt(var + LN_EPS)
    y = xn * gamma + beta
    h = y @ w1.astype(jnp.float32) + b1
    h = 0.5 * h * (1.0 + jax.scipy.special.erf(h / jnp.sqrt(2.0)))  # exact GELU
    out = h @ w2.astype(jnp.float32) + b2
    return out + xf


if __name__ == "__main__":
    # TODO(synk): only the Residual(PreNorm(FeedForward)) hot path of CViT's
    # Transformer is fused here; the conv backbone, GGCA pooling/attention,
    # SLA and the softmax attention blocks are left to standard XLA ops.

    # Test 1: tiny shapes consistent with the module (exercises H padding to
    # the 128-lane boundary and the small-row / single-tile path).
    B, N, D, H = 2, 8, 32, 64
    ks = jax.random.split(jax.random.PRNGKey(0), 6)
    x = jax.random.normal(ks[0], (B, N, D), dtype=jnp.float32)
    gamma = 1.0 + 0.1 * jax.random.normal(ks[1], (D,), dtype=jnp.float32)
    beta = 0.1 * jax.random.normal(ks[2], (D,), dtype=jnp.float32)
    w1 = jax.random.normal(ks[3], (D, H), dtype=jnp.float32) * 0.05
    b1 = jax.random.normal(ks[4], (H,), dtype=jnp.float32) * 0.05
    w2 = jax.random.normal(ks[5], (H, D), dtype=jnp.float32) * 0.05
    b2 = jnp.zeros((D,), dtype=jnp.float32)

    out = jax.block_until_ready(ffn_block(x, gamma, beta, w1, b1, w2, b2))
    ref = _reference(x, gamma, beta, w1, b1, w2, b2)
    assert out.shape == (B, N, D)
    assert jnp.allclose(out, ref, atol=2e-3, rtol=2e-3), "mismatch (test 1)"

    # Test 2: row count that doesn't divide the 512-row tile (row padding,
    # gm > 1) and a hidden dim that isn't a 128 multiple (gk > 1, hidden
    # padding + multi-step accumulation).
    B2, N2, D2, H2 = 2, 600, 128, 320
    k1, k2, k3, k4, k5, k6, k7 = jax.random.split(jax.random.PRNGKey(1), 7)
    xb = jax.random.normal(k1, (B2, N2, D2), dtype=jnp.float32)
    gb = 1.0 + 0.1 * jax.random.normal(k2, (D2,), dtype=jnp.float32)
    bb = 0.1 * jax.random.normal(k3, (D2,), dtype=jnp.float32)
    w1b = jax.random.normal(k4, (D2, H2), dtype=jnp.float32) * 0.03
    b1b = jax.random.normal(k5, (H2,), dtype=jnp.float32) * 0.03
    w2b = jax.random.normal(k6, (H2, D2), dtype=jnp.float32) * 0.03
    b2b = jax.random.normal(k7, (D2,), dtype=jnp.float32) * 0.03

    out2 = jax.block_until_ready(ffn_block(xb, gb, bb, w1b, b1b, w2b, b2b))
    ref2 = _reference(xb, gb, bb, w1b, b1b, w2b, b2b)
    assert out2.shape == (B2, N2, D2)
    assert jnp.allclose(out2, ref2, atol=2e-3, rtol=2e-3), "mismatch (test 2)"

    print("KERNEL_OK")
</pallas_src>

<mosaic_0001>
module attributes {stable_mosaic.version = 11 : i64} {
  func.func @_ffn_block_kernel(%arg0: i32, %arg1: i32, %arg2: memref<16x32xf32, #tpu.memory_space<vmem>>, %arg3: memref<1x32xf32, #tpu.memory_space<vmem>>, %arg4: memref<1x32xf32, #tpu.memory_space<vmem>>, %arg5: memref<32x128xf32, #tpu.memory_space<vmem>>, %arg6: memref<1x128xf32, #tpu.memory_space<vmem>>, %arg7: memref<128x32xf32, #tpu.memory_space<vmem>>, %arg8: memref<1x32xf32, #tpu.memory_space<vmem>>, %arg9: memref<16x32xf32, #tpu.memory_space<vmem>>, %arg10: memref<16x32xf32, #tpu.memory_space<vmem>>, %arg11: memref<16x32xf32, #tpu.memory_space<vmem>>) attributes {dimension_semantics = [#tpu.dimension_semantics<parallel>, #tpu.dimension_semantics<arbitrary>], iteration_bounds = array<i64: 1, 1>, scalar_prefetch = 0 : i64, scratch_operands = 2 : i64, tpu.core_type = #tpu.core_type<tc>, window_params = [{transform_indices = @transform_0, window_bounds = array<i64: 16, 32>}, {pipeline_mode = #tpu.pipeline_mode<synchronous>, transform_indices = @transform_1, window_bounds = array<i64: 1, 32>}, {pipeline_mode = #tpu.pipeline_mode<synchronous>, transform_indices = @transform_2, window_bounds = array<i64: 1, 32>}, {transform_indices = @transform_3, window_bounds = array<i64: 32, 128>}, {transform_indices = @transform_4, window_bounds = array<i64: 1, 128>}, {transform_indices = @transform_5, window_bounds = array<i64: 128, 32>}, {pipeline_mode = #tpu.pipeline_mode<synchronous>, transform_indices = @transform_6, window_bounds = array<i64: 1, 32>}, {transform_indices = @transform_7, window_bounds = array<i64: 16, 32>}]} {
    %c0_i32 = arith.constant 0 : i32
    %0 = arith.cmpi eq, %arg1, %c0_i32 : i32
    %1 = arith.extui %0 : i1 to i32
    %c0_i32_0 = arith.constant 0 : i32
    %2 = arith.cmpi ne, %1, %c0_i32_0 : i32
    scf.if %2 {
      %c0_30 = arith.constant 0 : index
      %c0_31 = arith.constant 0 : index
      %57 = vector.load %arg2[%c0_30, %c0_31] : memref<16x32xf32, #tpu.memory_space<vmem>>, vector<16x32xf32>
      %cst_32 = arith.constant dense<0.000000e+00> : vector<16xf32>
      %58 = vector.multi_reduction <add>, %57, %cst_32 [1] : vector<16x32xf32> to vector<16xf32>
      %59 = vector.shape_cast %58 : vector<16xf32> to vector<16x1xf32>
      %60 = arith.mulf %57, %57 : vector<16x32xf32>
      %cst_33 = arith.constant dense<0.000000e+00> : vector<16xf32>
      %61 = vector.multi_reduction <add>, %60, %cst_33 [1] : vector<16x32xf32> to vector<16xf32>
      %62 = vector.shape_cast %61 : vector<16xf32> to vector<16x1xf32>
      %cst_34 = arith.constant 3.125000e-02 : f32
      %63 = vector.broadcast %cst_34 : f32 to vector<16x1xf32>
      %64 = arith.mulf %59, %63 : vector<16x1xf32>
      %cst_35 = arith.constant 3.125000e-02 : f32
      %65 = vector.broadcast %cst_35 : f32 to vector<16x1xf32>
      %66 = arith.mulf %62, %65 : vector<16x1xf32>
      %67 = arith.mulf %64, %64 : vector<16x1xf32>
      %68 = arith.subf %66, %67 : vector<16x1xf32>
      %cst_36 = arith.constant 9.99999974E-6 : f32
      %69 = vector.broadcast %cst_36 : f32 to vector<16x1xf32>
      %70 = arith.addf %68, %69 : vector<16x1xf32>
      %71 = math.rsqrt %70 : vector<16x1xf32>
      %72 = vector.broadcast %64 : vector<16x1xf32> to vector<16x32xf32>
      %73 = arith.subf %57, %72 : vector<16x32xf32>
      %74 = vector.broadcast %71 : vector<16x1xf32> to vector<16x32xf32>
      %75 = arith.mulf %73, %74 : vector<16x32xf32>
      %c0_37 = arith.constant 0 : index
      %c0_38 = arith.constant 0 : index
      %76 = vector.load %arg3[%c0_37, %c0_38] : memref<1x32xf32, #tpu.memory_space<vmem>>, vector<1x32xf32>
      %77 = vector.broadcast %76 : vector<1x32xf32> to vector<16x32xf32>
      %78 = arith.mulf %75, %77 : vector<16x32xf32>
      %c0_39 = arith.constant 0 : index
      %c0_40 = arith.constant 0 : index
      %79 = vector.load %arg4[%c0_39, %c0_40] : memref<1x32xf32, #tpu.memory_space<vmem>>, vector<1x32xf32>
      %80 = vector.broadcast %79 : vector<1x32xf32> to vector<16x32xf32>
      %81 = arith.addf %78, %80 : vector<16x32xf32>
      %c0_41 = arith.constant 0 : index
      %c0_42 = arith.constant 0 : index
      %82 = vector.load %arg10[%c0_41, %c0_42] : memref<16x32xf32, #tpu.memory_space<vmem>>, vector<16x32xf32>
      tpu.vector_store %arg10[%c0_41, %c0_42], %81 {strides = array<i32>} : memref<16x32xf32, #tpu.memory_space<vmem>>, vector<16x32xf32>,
      %cst_43 = arith.constant 0.000000e+00 : f32
      %83 = vector.broadcast %cst_43 : f32 to vector<16x32xf32>
      %c0_44 = arith.constant 0 : index
      %c0_45 = arith.constant 0 : index
      %84 = vector.load %arg11[%c0_44, %c0_45] : memref<16x32xf32, #tpu.memory_space<vmem>>, vector<16x32xf32>
      tpu.vector_store %arg11[%c0_44, %c0_45], %83 {strides = array<i32>} : memref<16x32xf32, #tpu.memory_space<vmem>>, vector<16x32xf32>,
    } else {
    }
    %c0 = arith.constant 0 : index
    %c0_1 = arith.constant 0 : index
    %3 = vector.load %arg10[%c0, %c0_1] : memref<16x32xf32, #tpu.memory_space<vmem>>, vector<16x32xf32>
    %c0_2 = arith.constant 0 : index
    %c0_3 = arith.constant 0 : index
    %4 = vector.load %arg5[%c0_2, %c0_3] : memref<32x128xf32, #tpu.memory_space<vmem>>, vector<32x128xf32>
    %cst = arith.constant dense<0.000000e+00> : vector<16x128xf32>
    %5 = tpu.matmul %3, %4, %cst {dimension_numbers = #tpu.dot_dimension_numbers<[1], [0], [0], [1], [0, 0, 1, 1], [], []>} : vector<16x32xf32>, vector<32x128xf32>, vector<16x128xf32> -> vector<16x128xf32>
    %c0_4 = arith.constant 0 : index
    %c0_5 = arith.constant 0 : index
    %6 = vector.load %arg6[%c0_4, %c0_5] : memref<1x128xf32, #tpu.memory_space<vmem>>, vector<1x128xf32>
    %7 = vector.broadcast %6 : vector<1x128xf32> to vector<16x128xf32>
    %8 = arith.addf %5, %7 : vector<16x128xf32>
    %cst_6 = arith.constant 5.000000e-01 : f32
    %9 = vector.broadcast %cst_6 : f32 to vector<16x128xf32>
    %10 = arith.mulf %9, %8 : vector<16x128xf32>
    %cst_7 = arith.constant 0.707106769 : f32
    %11 = vector.broadcast %cst_7 : f32 to vector<16x128xf32>
    %12 = arith.mulf %8, %11 : vector<16x128xf32>
    %13 = math.absf %12 : vector<16x128xf32>
    %cst_8 = arith.constant 0.327591091 : f32
    %14 = vector.broadcast %cst_8 : f32 to vector<16x128xf32>
    %15 = arith.mulf %14, %13 : vector<16x128xf32>
    %cst_9 = arith.constant 1.000000e+00 : f32
    %16 = vector.broadcast %cst_9 : f32 to vector<16x128xf32>
    %17 = arith.addf %16, %15 : vector<16x128xf32>
    %cst_10 = arith.constant 1.000000e+00 : f32
    %18 = vector.broadcast %cst_10 : f32 to vector<16x128xf32>
    %19 = arith.divf %18, %17 : vector<16x128xf32>
    %cst_11 = arith.constant 1.06140542 : f32
    %20 = vector.broadcast %cst_11 : f32 to vector<16x128xf32>
    %21 = arith.mulf %20, %19 : vector<16x128xf32>
    %cst_12 = arith.constant -1.45315206 : f32
    %22 = vector.broadcast %cst_12 : f32 to vector<16x128xf32>
    %23 = arith.addf %21, %22 : vector<16x128xf32>
    %24 = arith.mulf %23, %19 : vector<16x128xf32>
    %cst_13 = arith.constant 1.42141378 : f32
    %25 = vector.broadcast %cst_13 : f32 to vector<16x128xf32>
    %26 = arith.addf %24, %25 : vector<16x128xf32>
    %27 = arith.mulf %26, %19 : vector<16x128xf32>
    %cst_14 = arith.constant -0.284496725 : f32
    %28 = vector.broadcast %cst_14 : f32 to vector<16x128xf32>
    %29 = arith.addf %27, %28 : vector<16x128xf32>
    %30 = arith.mulf %29, %19 : vector<16x128xf32>
    %cst_15 = arith.constant 0.254829586 : f32
    %31 = vector.broadcast %cst_15 : f32 to vector<16x128xf32>
    %32 = arith.addf %30, %31 : vector<16x128xf32>
    %33 = arith.mulf %32, %19 : vector<16x128xf32>
    %cst_16 = arith.constant 0.000000e+00 : f32
    %34 = vector.broadcast %cst_16 : f32 to vector<16x128xf32>
    %35 = arith.subf %34, %13 : vector<16x128xf32>
    %36 = arith.mulf %35, %13 : vector<16x128xf32>
    %37 = math.exp %36 : vector<16x128xf32>
    %38 = arith.mulf %33, %37 : vector<16x128xf32>
    %cst_17 = arith.constant 1.000000e+00 : f32
    %39 = vector.broadcast %cst_17 : f32 to vector<16x128xf32>
    %40 = arith.subf %39, %38 : vector<16x128xf32>
    %cst_18 = arith.constant 0.000000e+00 : f32
    %41 = vector.broadcast %cst_18 : f32 to vector<16x128xf32>
    %42 = arith.cmpf olt, %12, %41 : vector<16x128xf32>
    %cst_19 = arith.constant 0.000000e+00 : f32
    %43 = vector.broadcast %cst_19 : f32 to vector<16x128xf32>
    %44 = arith.subf %43, %40 : vector<16x128xf32>
    %45 = arith.select %42, %44, %40 : vector<16x128xi1>, vector<16x128xf32>
    %cst_20 = arith.constant 1.000000e+00 : f32
    %46 = vector.broadcast %cst_20 : f32 to vector<16x128xf32>
    %47 = arith.addf %46, %45 : vector<16x128xf32>
    %48 = arith.mulf %10, %47 : vector<16x128xf32>
    %c0_21 = arith.constant 0 : index
    %c0_22 = arith.constant 0 : index
    %49 = vector.load %arg11[%c0_21, %c0_22] : memref<16x32xf32, #tpu.memory_space<vmem>>, vector<16x32xf32>
    %c0_23 = arith.constant 0 : index
    %c0_24 = arith.constant 0 : index
    %50 = vector.load %arg7[%c0_23, %c0_24] : memref<128x32xf32, #tpu.memory_space<vmem>>, vector<128x32xf32>
    %cst_25 = arith.constant dense<0.000000e+00> : vector<16x32xf32>
    %51 = tpu.matmul %48, %50, %cst_25 {dimension_numbers = #tpu.dot_dimension_numbers<[1], [0], [0], [1], [0, 0, 1, 1], [], []>} : vector<16x128xf32>, vector<128x32xf32>, vector<16x32xf32> -> vector<16x32xf32>
    %52 = arith.addf %49, %51 : vector<16x32xf32>
    %c0_26 = arith.constant 0 : index
    %c0_27 = arith.constant 0 : index
    %53 = vector.load %arg11[%c0_26, %c0_27] : memref<16x32xf32, #tpu.memory_space<vmem>>, vector<16x32xf32>
    tpu.vector_store %arg11[%c0_26, %c0_27], %52 {strides = array<i32>} : memref<16x32xf32, #tpu.memory_space<vmem>>, vector<16x32xf32>,
    %c0_i32_28 = arith.constant 0 : i32
    %54 = arith.cmpi eq, %arg1, %c0_i32_28 : i32
    %55 = arith.extui %54 : i1 to i32
    %c0_i32_29 = arith.constant 0 : i32
    %56 = arith.cmpi ne, %55, %c0_i32_29 : i32
    scf.if %56 {
      %c0_30 = arith.constant 0 : index
      %c0_31 = arith.constant 0 : index
      %57 = vector.load %arg11[%c0_30, %c0_31] : memref<16x32xf32, #tpu.memory_space<vmem>>, vector<16x32xf32>
      %c0_32 = arith.constant 0 : index
      %c0_33 = arith.constant 0 : index
      %58 = vector.load %arg8[%c0_32, %c0_33] : memref<1x32xf32, #tpu.memory_space<vmem>>, vector<1x32xf32>
      %59 = vector.broadcast %58 : vector<1x32xf32> to vector<16x32xf32>
      %60 = arith.addf %57, %59 : vector<16x32xf32>
      %c0_34 = arith.constant 0 : index
      %c0_35 = arith.constant 0 : index
      %61 = vector.load %arg2[%c0_34, %c0_35] : memref<16x32xf32, #tpu.memory_space<vmem>>, vector<16x32xf32>
      %62 = arith.addf %60, %61 : vector<16x32xf32>
      %c0_36 = arith.constant 0 : index
      %c0_37 = arith.constant 0 : index
      %63 = vector.load %arg9[%c0_36, %c0_37] : memref<16x32xf32, #tpu.memory_space<vmem>>, vector<16x32xf32>
      tpu.vector_store %arg9[%c0_36, %c0_37], %62 {strides = array<i32>} : memref<16x32xf32, #tpu.memory_space<vmem>>, vector<16x32xf32>,
    } else {
    }
    return
  }
  func.func @transform_0(%arg0: i32, %arg1: i32) -> (i32, i32) {
    %c0_i32 = arith.constant 0 : i32
    %c0_i32_0 = arith.constant 0 : i32
    return %arg0, %c0_i32 : i32, i32
  }
  func.func @transform_1(%arg0: i32, %arg1: i32) -> (i32, i32) {
    %c0_i32 = arith.constant 0 : i32
    %c0_i32_0 = arith.constant 0 : i32
    %c0_i32_1 = arith.constant 0 : i32
    return %c0_i32, %c0_i32_0 : i32, i32
  }
  func.func @transform_2(%arg0: i32, %arg1: i32) -> (i32, i32) {
    %c0_i32 = arith.constant 0 : i32
    %c0_i32_0 = arith.constant 0 : i32
    %c0_i32_1 = arith.constant 0 : i32
    return %c0_i32, %c0_i32_0 : i32, i32
  }
  func.func @transform_3(%arg0: i32, %arg1: i32) -> (i32, i32) {
    %c0_i32 = arith.constant 0 : i32
    %c0_i32_0 = arith.constant 0 : i32
    return %c0_i32, %arg1 : i32, i32
  }
  func.func @transform_4(%arg0: i32, %arg1: i32) -> (i32, i32) {
    %c0_i32 = arith.constant 0 : i32
    %c0_i32_0 = arith.constant 0 : i32
    return %c0_i32, %arg1 : i32, i32
  }
  func.func @transform_5(%arg0: i32, %arg1: i32) -> (i32, i32) {
    %c0_i32 = arith.constant 0 : i32
    %c0_i32_0 = arith.constant 0 : i32
    return %arg1, %c0_i32 : i32, i32
  }
  func.func @transform_6(%arg0: i32, %arg1: i32) -> (i32, i32) {
    %c0_i32 = arith.constant 0 : i32
    %c0_i32_0 = arith.constant 0 : i32
    %c0_i32_1 = arith.constant 0 : i32
    return %c0_i32, %c0_i32_0 : i32, i32
  }
  func.func @transform_7(%arg0: i32, %arg1: i32) -> (i32, i32) {
    %c0_i32 = arith.constant 0 : i32
    %c0_i32_0 = arith.constant 0 : i32
    return %arg0, %c0_i32 : i32, i32
  }
}

</mosaic_0001>

<bundles_post_ra>
// kernel: tpu_custom_call.1
= control target key start
LH: loop header
LB: loop body
LE: loop exit
PB: predicated region body
PF: predicated region fallthrough
CT: control target
= control target key end

     0   :  { %vm33_vm0 = vcmask 261120   ;;  %s686_s0 = inlined_call_operand.vmem [shape: f32[16,32], index: 0, kind: input, shape index: {}]   ;;  %s687_s1 = inlined_call_operand.vmem [shape: f32[1,32], index: 1, kind: input, shape index: {}]   ;;  %s688_s2 = inlined_call_operand.vmem [shape: f32[1,32], index: 2, kind: input, shape index: {}]   ;;  %s689_s3 = inlined_call_operand.vmem [shape: f32[32,128], index: 3, kind: input, shape index: {}]   ;;  %s690_s4 = inlined_call_operand.vmem [shape: f32[1,128], index: 4, kind: input, shape index: {}]   ;;  %s691_s5 = inlined_call_operand.vmem [shape: f32[128,32], index: 5, kind: input, shape index: {}]   ;;  %s692_s6 = inlined_call_operand.vmem [shape: f32[1,32], index: 6, kind: input, shape index: {}]   ;;  %s693_s7 = inlined_call_operand.hbm [shape: f32[16,32], index: 7, kind: output, shape index: {}]  }
   0x1   :  { %v571_v0 = vld [vmem:[%s686_s0] sm:$0xff]  ;;  %v576_v1 = vld [vmem:[%s686_s0 + $0x8] sm:$0xff] }
   0x2   :  { %12 = vsyncpa [#allocation5], 0  ;;  %v34_v2 = vsel %vm33_vm0, %v571_v0, 0.0  ;;  %v40_v3 = vmul.f32 %v571_v0, %v571_v0  ;;  %v41_v4 = vmul.f32 %v576_v1, %v576_v1  ;;  %v37_v6 = vsel %vm33_vm0, %v576_v1, 0.0  ;;  %v88_v8 = vld [vmem:[%s689_s3] sm:$0xff]  ;;  %v89_v9 = vld [vmem:[%s689_s3 + $0x8] sm:$0xff] }
   0x3   :  { %35 = vadd.xlane.f32.xlu0 %v34_v2  ;;  %v444_v10 = vpack.c.bf16 %v89_v9, %v88_v8  ;;  %v90_v11 = vld [vmem:[%s689_s3 + $0x10] sm:$0xff]  ;;  %v91_v12 = vld [vmem:[%s689_s3 + $0x18] sm:$0xff]  ;;  %v368_v30 = vld [vmem:[%s687_s1] ss:$0 sm:$0xff]  ;;  %s525_s20 = smov [#allocation4]  }
   0x4   :  { %v42_v5 = vsel %vm33_vm0, %v40_v3, 0.0  ;;  %v45_v7 = vsel %vm33_vm0, %v41_v4, 0.0  ;;  %v448_v13 = vpack.c.bf16 %v91_v12, %v90_v11  ;;  %v369_v32 = vld [vmem:[%s688_s2] ss:$0 sm:$0xff]  ;;  %v238_v43 = vld [vmem:[%s691_s5 + $0x8] sm:$0xff]  ;;  %v239_v44 = vld [vmem:[%s691_s5 + $0x10] sm:$0xff] }
   0x5   :  { %43 = vadd.xlane.f32.xlu1 %v42_v5  ;;  %445 = vmatprep.subr.bf16.mxu0 %v444_v10  ;;  %v237_v42 = vld [vmem:[%s691_s5] sm:$0xff]  ;;  %v240_v46 = vld [vmem:[%s691_s5 + $0x18] sm:$0xff]  ;;  %v242_v49 = vld [vmem:[%s691_s5 + $0x28] sm:$0xff]  ;;  %v524_v4 = vmov 0.0   ;;  %s357_s21 = sshll.u32 %s525_s20, 4  ;;  %s358_s21 = int_to_ptr.vmem [resolvable:$true] %s357_s21 }
   0x6   :  { %447 = vmatpush3.bf16.msra.mxu0 %v444_v10  ;;  %v452_v45 = vpack.c.bf16 %v238_v43, %v237_v42  ;;  %v456_v47 = vpack.c.bf16 %v240_v46, %v239_v44  ;;  %v241_v48 = vld [vmem:[%s691_s5 + $0x20] sm:$0xff]  ;;  %v243_v51 = vld [vmem:[%s691_s5 + $0x30] sm:$0xff]  ;;  %v244_v52 = vld [vmem:[%s691_s5 + $0x38] sm:$0xff]  ;;  %85 = vst.msk [vmem:[#allocation3 + $0x8] sm:$0xff] %vm33_vm0, %v524_v4  ;;  %s500_s22 = scalar_lea.vmem %s358_s21, 256  ;;  %p505_p1 = scmp.lt.s32.totalorder %s358_s21, %s358_s21 }
   0x7   :  { %38 = vadd.xlane.f32.xlu0 %v37_v6  ;;  %449 = vmatprep.subr.bf16.mxu0 %v448_v13  ;;  %v460_v50 = vpack.c.bf16 %v242_v49, %v241_v48  ;;  %v464_v53 = vpack.c.bf16 %v244_v52, %v243_v51  ;;  %v245_v54 = vld [vmem:[%s691_s5 + $0x40] sm:$0xff]  ;;  %v246_v55 = vld [vmem:[%s691_s5 + $0x48] sm:$0xff]  ;;  %v247_v57 = vld [vmem:[%s691_s5 + $0x50] sm:$0xff]  ;;  %84 = vst.msk [vmem:[#allocation3] sm:$0xff] %vm33_vm0, %v524_v4  ;;  %p501_p0 = scmp.ne.s32.totalorder %s358_s21, %s500_s22  ;;  %p506_p2 = scmp.lt.s32.totalorder %s500_s22, %s500_s22 }
   0x8   :  { %453 = vmatprep.subr.bf16.mxu1 %v452_v45  ;;  %v468_v56 = vpack.c.bf16 %v246_v55, %v245_v54  ;;  %v248_v58 = vld [vmem:[%s691_s5 + $0x58] sm:$0xff]  ;;  %v249_v60 = vld [vmem:[%s691_s5 + $0x60] sm:$0xff]  ;;  %v250_v61 = vld [vmem:[%s691_s5 + $0x68] sm:$0xff] }
   0x9   :  { %46 = vadd.xlane.f32.xlu1 %v45_v7  ;;  %455 = vmatpush3.bf16.msra.mxu1 %v452_v45  ;;  %v472_v59 = vpack.c.bf16 %v248_v58, %v247_v57  ;;  %v476_v62 = vpack.c.bf16 %v250_v61, %v249_v60  ;;  %v251_v63 = vld [vmem:[%s691_s5 + $0x70] sm:$0xff]  ;;  %v252_v2 = vld [vmem:[%s691_s5 + $0x78] sm:$0xff]  ;;  %v370_v5 = vld [vmem:[%s690_s4] ss:$0 sm:$0xff]  ;;  %p507_p3 = por %p506_p2, %p505_p1 }
   0xa   :  { %451 = vmatpush3.bf16.msra.mxu0 %v448_v13  ;;  %457 = vmatprep.subr.bf16.mxu1 %v456_v47  ;;  %v480_v3 = vpack.c.bf16 %v252_v2, %v251_v63  ;;  %v373_v4 = vld [vmem:[%s692_s6] ss:$0 sm:$0xff] }
   0xb   :  { %p508_p4 = pnand %p507_p3, %p501_p0 }
   0xd   :  { %459 = vmatpush3.bf16.msra.mxu1 %v456_v47  ;;  %v236_v60 = vld [vmem:[#allocation3 + $0x8] sm:$0xff] }
   0xe   :  { %461 = vmatprep.subr.bf16.mxu1 %v460_v50  ;;  %v235_v61 = vld [vmem:[#allocation3] sm:$0xff] }
  0x11   :  { %463 = vmatpush3.bf16.msra.mxu1 %v460_v50 }
  0x12   :  { %465 = vmatprep.subr.bf16.mxu1 %v464_v53 }
  0x15   :  { %467 = vmatpush3.bf16.msra.mxu1 %v464_v53 }
  0x16   :  { %469 = vmatprep.subr.bf16.mxu1 %v468_v56 }
  0x19   :  { %471 = vmatpush3.bf16.msra.mxu1 %v468_v56 }
  0x1a   :  { %473 = vmatprep.subr.bf16.mxu1 %v472_v59 }
  0x1d   :  { %475 = vmatpush3.bf16.msra.mxu1 %v472_v59 }
  0x1e   :  { %477 = vmatprep.subr.bf16.mxu1 %v476_v62 }
  0x21   :  { %479 = vmatpush3.bf16.msra.mxu1 %v476_v62 }
  0x22   :  { %481 = vmatprep.subr.bf16.mxu1 %v480_v3 }
  0x25   :  { %483 = vmatpush3.bf16.msra.mxu1 %v480_v3 }
  0x90   :  { %v36_v14 = vpop.xlane.xlu0 %35 }
  0x91   :  { %v48_v15 = vmul.f32 0.03125, %v36_v14 }
  0x92   :  { %v44_v16 = vpop.xlane.xlu1 %43 }
  0x93   :  { %v52_v17 = vmul.f32 %v48_v15, %v48_v15  ;;  %v50_v18 = vmul.f32 0.03125, %v44_v16  ;;  %v60_v28 = vsub.f32 %v571_v0, %v48_v15 }
  0x94   :  { %v39_v19 = vpop.xlane.xlu0 %38 }
  0x95   :  { %v54_v20 = vsub.f32 %v50_v18, %v52_v17  ;;  %v49_v21 = vmul.f32 0.03125, %v39_v19 }
  0x96   :  { %v47_v22 = vpop.xlane.xlu1 %46 }
  0x97   :  { %v56_v23 = vadd.f32 1e-05, %v54_v20  ;;  %v53_v24 = vmul.f32 %v49_v21, %v49_v21  ;;  %v51_v25 = vmul.f32 0.03125, %v47_v22  ;;  %v61_v34 = vsub.f32 %v576_v1, %v49_v21 }
  0x99   :  { %488 = vrsqrt.f32 %v56_v23  ;;  %v55_v26 = vsub.f32 %v51_v25, %v53_v24 }
  0x9b   :  { %v57_v27 = vadd.f32 1e-05, %v55_v26 }
  0x9d   :  { %490 = vrsqrt.f32 %v57_v27 }
  0xa3   :  { %v489_v29 = vpop.eup %488 }
  0xa4   :  { %v62_v31 = vmul.f32 %v489_v29, %v60_v28 }
  0xa6   :  { %v71_v33 = vmul.f32 %v368_v30, %v62_v31 }
  0xa7   :  { %v491_v35 = vpop.eup %490 }
  0xa8   :  { %v80_v36 = vadd.f32 %v369_v32, %v71_v33  ;;  %v63_v37 = vmul.f32 %v491_v35, %v61_v34 }
  0xaa   :  { %82 = vst.msk [vmem:[#allocation2] sm:$0xff] %vm33_vm0, %v80_v36  ;;  %v72_v38 = vmul.f32 %v368_v30, %v63_v37 }
  0xac   :  { %v81_v39 = vadd.f32 %v369_v32, %v72_v38 }
  0xae   :  { %83 = vst.msk [vmem:[#allocation2 + $0x8] sm:$0xff] %vm33_vm0, %v81_v39 }
  0xb1   :  { %v86_v40 = vld [vmem:[#allocation2] sm:$0xff] }
  0xb2   :  { %406 = vmatprep.mubr.msk.f32.mxu0 %vm33_vm0, %v86_v40 }
  0xb5   :  { %v87_v41 = vld [vmem:[#allocation2 + $0x8] sm:$0xff] }
  0xb6   :  { %407 = vmatmul.mubr.msk.f32.vlgmr.msra.gmra.mrb[0].mxu0 %vm33_vm0, %v87_v41 }
 0x189   :  { %v408_v6 = vpop.f32.mrb[0].mxu0 }
 0x18a   :  { %v178_v7 = vadd.f32 %v408_v6, %v370_v5  ;;  %v172_v8 = vpop.f32.mrb[1].mxu0 }
 0x18b   :  { %v173_v9 = vadd.f32 %v370_v5, %v172_v8 }
 0x18c   :  { %v184_v10 = vmul.f32 0.70710677, %v178_v7  ;;  %v182_v57 = vmul.f32 0.5, %v178_v7 }
 0x18d   :  { %v183_v11 = vmul.f32 0.70710677, %v173_v9  ;;  %v181_v55 = vmul.f32 0.5, %v173_v9 }
 0x18e   :  { %v186_v12 = vand.u32 2147483647, %v184_v10  ;;  %vm226_vm1 = vcmp.lt.f32.partialorder %v184_v10, 0.0 }
 0x18f   :  { %v185_v13 = vand.u32 2147483647, %v183_v11  ;;  %vm225_vm2 = vcmp.lt.f32.partialorder %v183_v11, 0.0 }
 0x190   :  { %v188_v14 = vmul.f32 0.3275911, %v186_v12  ;;  %v214_v18 = vsub.f32 0.0, %v186_v12 }
 0x191   :  { %v187_v15 = vmul.f32 0.3275911, %v185_v13  ;;  %v213_v19 = vsub.f32 0.0, %v185_v13 }
 0x192   :  { %v190_v16 = vadd.f32 1.0, %v188_v14  ;;  %v216_v21 = vmul.f32 %v214_v18, %v186_v12 }
 0x193   :  { %v189_v17 = vadd.f32 1.0, %v187_v15  ;;  %v215_v23 = vmul.f32 %v213_v19, %v185_v13 }
 0x194   :  { %492 = vrcp.f32 %v190_v16  ;;  %v219_v27 = vmul.f32 1.442695, %v216_v21 }
 0x195   :  { %494 = vrcp.f32 %v189_v17  ;;  %v217_v29 = vmul.f32 1.442695, %v215_v23 }
 0x196   :  { %496 = vpow2.f32 %v219_v27 }
 0x197   :  { %498 = vpow2.f32 %v217_v29 }
 0x19e   :  { %v493_v20 = vpop.eup %492 }
 0x19f   :  { %v495_v22 = vpop.eup %494  ;;  %v196_v24 = vmul.f32 1.0614054, %v493_v20 }
 0x1a0   :  { %v195_v25 = vmul.f32 1.0614054, %v495_v22  ;;  %v497_v43 = vpop.eup %496 }
 0x1a1   :  { %v198_v26 = vadd.f32 -1.4531521, %v196_v24  ;;  %v499_v45 = vpop.eup %498 }
 0x1a2   :  { %v197_v28 = vadd.f32 -1.4531521, %v195_v25 }
 0x1a3   :  { %v200_v30 = vmul.f32 %v493_v20, %v198_v26 }
 0x1a4   :  { %v199_v31 = vmul.f32 %v495_v22, %v197_v28 }
 0x1a5   :  { %v202_v32 = vadd.f32 1.4214138, %v200_v30 }
 0x1a6   :  { %v201_v33 = vadd.f32 1.4214138, %v199_v31 }
 0x1a7   :  { %v204_v34 = vmul.f32 %v493_v20, %v202_v32 }
 0x1a8   :  { %v203_v35 = vmul.f32 %v495_v22, %v201_v33 }
 0x1a9   :  { %v206_v36 = vadd.f32 -0.28449672, %v204_v34 }
 0x1aa   :  { %v205_v37 = vadd.f32 -0.28449672, %v203_v35 }
 0x1ab   :  { %v208_v38 = vmul.f32 %v493_v20, %v206_v36 }
 0x1ac   :  { %v207_v39 = vmul.f32 %v495_v22, %v205_v37 }
 0x1ad   :  { %v210_v40 = vadd.f32 0.2548296, %v208_v38 }
 0x1ae   :  { %v209_v41 = vadd.f32 0.2548296, %v207_v39 }
 0x1af   :  { %v212_v42 = vmul.f32 %v493_v20, %v210_v40 }
 0x1b0   :  { %v211_v44 = vmul.f32 %v495_v22, %v209_v41 }
 0x1b1   :  { %v222_v46 = vmul.f32 %v497_v43, %v212_v42 }
 0x1b2   :  { %v221_v47 = vmul.f32 %v499_v45, %v211_v44 }
 0x1b3   :  { %v224_v48 = vsub.f32 1.0, %v222_v46 }
 0x1b4   :  { %v223_v49 = vsub.f32 1.0, %v221_v47 }
 0x1b5   :  { %v228_v50 = vsub.f32 0.0, %v224_v48 }
 0x1b6   :  { %v227_v51 = vsub.f32 0.0, %v223_v49 }
 0x1b7   :  { %v230_v52 = vsel %vm226_vm1, %v228_v50, %v224_v48 }
 0x1b8   :  { %v229_v53 = vsel %vm225_vm2, %v227_v51, %v223_v49  ;;  %v232_v54 = vadd.f32 1.0, %v230_v52 }
 0x1b9   :  { %v231_v56 = vadd.f32 1.0, %v229_v53 }
 0x1ba   :  { %v234_v59 = vmul.f32 %v232_v54, %v182_v57 }
 0x1bb   :  { %v233_v58 = vmul.f32 %v231_v56, %v181_v55 }
 0x1bd   :  { %441 = vmatprep.mubr.f32.mxu1 %v233_v58 }
 0x1be   :  { %442 = vmatmul.mubr.f32.vlgmr.msra.gmra.mrb[0].mxu1 %v234_v59 }
 0x291   :  { %v443_v62 = vpop.f32.mrb[0].mxu1 }
 0x292   :  { %v329_v63 = vadd.f32 %v443_v62, %v236_v60  ;;  %v319_v2 = vpop.f32.mrb[1].mxu1 }
 0x293   :  { %v328_v3 = vadd.f32 %v319_v2, %v235_v61 }
 0x294   :  { %331 = vst.msk [vmem:[#allocation3 + $0x8] sm:$0xff] %vm33_vm0, %v329_v63 }
 0x295   :  { %330 = vst.msk [vmem:[#allocation3] sm:$0xff] %vm33_vm0, %v328_v3 }
 0x29b   :  { %v336_v5 = vld [vmem:[#allocation3 + $0x8] sm:$0xff] }
 0x29c   :  { %v335_v6 = vld [vmem:[#allocation3] sm:$0xff]  ;;  %v345_v7 = vadd.f32 %v373_v4, %v336_v5 }
 0x29d   :  { %v344_v8 = vadd.f32 %v373_v4, %v335_v6 }
 0x29e   :  { %v349_v9 = vadd.f32 %v345_v7, %v576_v1 }
 0x29f   :  { %v348_v10 = vadd.f32 %v344_v8, %v571_v0 }
 0x2a0   :  { %351 = vst.msk [vmem:[#allocation4 + $0x8] sm:$0xff] %vm33_vm0, %v349_v9 }
 0x2a1   :  { %350 = vst.msk [vmem:[#allocation4] sm:$0xff] %vm33_vm0, %v348_v10 }
 0x2a2   :  { %511 = shalt.err (!%p508_p4)
}
 0x2a3   :  { %s512_s24 = scalar_lea.hbm %s693_s7, 256 }
 0x2a4   :  { %p513_p5 = scmp.ne.s32.totalorder %s693_s7, %s512_s24  ;;  %p516_p6 = scmp.lt.u32.totalorder %s512_s24, %s693_s7 }
 0x2a6   :  { %p518_p7 = pnand %p516_p6, %p513_p5 }
 0x2a8   :  { %521 = shalt.err (!%p518_p7)
}
 0x2a9   :  { %s526_s28 = smov 128   ;;  %s527_s29 = smov 8  }
 0x2aa   :  { %363 = dma.vmem_to_hbm [thread:$0]  %s358_s21, 256, %s693_s7, [#allocation5], %s526_s28, %s526_s28, %s527_s29  }
 0x2ab   :  { %522 = dma.done.wait [#allocation5], 256  }
 0x2ac   :  { %523 = vsyncadd [#allocation5], 4294967040 }
 0x2ad   :  { %367 = vsyncpa [#allocation5], 1 }

</bundles_post_ra>
